<compile_context>
chip_gen: v6e
topology: v6e:2x2x1
jax: 0.10.0
libtpu: 0.0.40
codegen_flags: <defaults>
</compile_context>

<pallas_src>
import functools

import jax
import jax.numpy as jnp
from jax.experimental import pallas as pl
from jax.experimental.pallas import tpu as pltpu

DEFAULT_ALPHA = 0.05
# Per-grid-step HBM traffic budget (3 input channels + 1 output channel).
# 16 MiB/step => ~32 MiB double-buffered blocks: fits v7x's 64 MiB physical
# VMEM with headroom and keeps per-step overhead <= ~7% even at 3.2 TB/s.
DEFAULT_BLOCK_BYTES = 16 << 20


def _cdiv(a: int, b: int) -> int:
    return -(-a // b)


def _round_up(x: int, m: int) -> int:
    return _cdiv(x, m) * m


def _corner_response_kernel(x_ref, o_ref, *, alpha):
    # x_ref block: (nb, 3, tile_rows, 128)  channels: 0=Sxx, 1=Syy, 2=Sxy
    # o_ref block: (nb, 1, tile_rows, 128)
    sxx = x_ref[:, 0, :, :].astype(jnp.float32)
    syy = x_ref[:, 1, :, :].astype(jnp.float32)
    sxy = x_ref[:, 2, :, :].astype(jnp.float32)

    det = sxx * syy - sxy * sxy
    tr = sxx + syy
    r = det - alpha * (tr * tr)

    o_ref[:, 0, :, :] = r.astype(o_ref.dtype)


def corner_response(x: jax.Array,
                    alpha: float = DEFAULT_ALPHA,
                    max_block_bytes: int = DEFAULT_BLOCK_BYTES) -> jax.Array:
    """x: (N, 3, H, W) -> (N, 1, H, W) Harris corner response R."""
    n, c, h, w = x.shape
    assert c == 3, "CornerResponseLayer expects 3 channels (Sxx, Syy, Sxy)"
    dtype = x.dtype
    itemsize = jnp.dtype(dtype).itemsize

    # Flatten spatial and reshape to a lane-dense (rows, 128) slab.  Pad only
    # to 128 lanes (no extra HBM pass when H*W is already a multiple of 128).
    l = h * w
    l_pad = _round_up(l, 128)
    x_flat = x.reshape(n, 3, l)
    if l_pad != l:
        x_flat = jnp.pad(x_flat, ((0, 0), (0, 0), (0, l_pad - l)))
    rows = l_pad // 128
    x4 = x_flat.reshape(n, 3, rows, 128)

    # Native sublane tile height for this dtype (8 f32 / 16 bf16 / 32 int8-fp8).
    sub_align = 8 * max(1, 4 // itemsize)

    # Spatial elements per channel per grid step; budget counts bytes moved
    # per element (3 in + 1 out) so per-step HBM traffic is dtype-independent.
    max_elems = max(sub_align * 128, max_block_bytes // (4 * itemsize))
    cap_rows = max(sub_align, ((max_elems // 128) // sub_align) * sub_align)

    if rows <= cap_rows:
        # One spatial tile covers the whole image; fold batch elements so each
        # step still moves MiB-scale data, but keep >= 2 grid steps when N > 1
        # (dual-TensorCore v7x).  Ragged last batch block handled by cdiv grid.
        tile_rows = rows                      # equals full dim -> always legal
        nb = min(n, max(1, max_elems // (rows * 128)))
        if n > 1:
            nb = min(nb, _cdiv(n, 2))
        nt = 1
    else:
        tile_rows = cap_rows                  # multiple of sub_align
        nb = 1
        nt = _cdiv(rows, tile_rows)           # ragged last spatial block OK

    grid = (_cdiv(n, nb), nt)

    # Real (sublane-padded) VMEM footprint of one double-buffered block pair.
    rows_acc = _round_up(tile_rows, sub_align)
    in_block_bytes = nb * 3 * rows_acc * 128 * itemsize
    out_block_bytes = nb * 1 * rows_acc * 128 * itemsize
    vmem_limit = int(min(2 * (in_block_bytes + out_block_bytes) + (4 << 20),
                         100 << 20))

    kernel = functools.partial(_corner_response_kernel, alpha=float(alpha))

    out = pl.pallas_call(
        kernel,
        out_shape=jax.ShapeDtypeStruct((n, 1, rows, 128), dtype),
        grid_spec=pltpu.PrefetchScalarGridSpec(
            num_scalar_prefetch=0,
            grid=grid,
            in_specs=[pl.BlockSpec((nb, 3, tile_rows, 128),
                                   lambda i, j: (i, 0, j, 0))],
            out_specs=pl.BlockSpec((nb, 1, tile_rows, 128),
                                   lambda i, j: (i, 0, j, 0)),
        ),
        compiler_params=pltpu.CompilerParams(
            dimension_semantics=("parallel", "parallel"),
            vmem_limit_bytes=vmem_limit,
        ),
    )(x4)

    out = out.reshape(n, 1, l_pad)
    if l_pad != l:
        out = out[:, :, :l]
    return out.reshape(n, 1, h, w)


def corner_response_ref(x: jax.Array, alpha: float = DEFAULT_ALPHA) -> jax.Array:
    """Pure-JAX reference matching the PyTorch forward exactly."""
    det = x[:, 0, :, :] * x[:, 1, :, :] - x[:, 2, :, :] * x[:, 2, :, :]
    tr = x[:, 0, :, :] + x[:, 1, :, :]
    out = det - alpha * tr ** 2
    return out[:, None, :, :]


if __name__ == "__main__":
    key = jax.random.PRNGKey(0)
    k0, k1, k2, k3 = jax.random.split(key, 4)

    # Case 1: lane-aligned small images (H*W multiple of 128), 2 grid steps.
    x = jax.random.normal(k0, (2, 3, 16, 16), dtype=jnp.float32)
    out = jax.block_until_ready(corner_response(x))
    ref = corner_response_ref(x)
    assert out.shape == (2, 1, 16, 16), out.shape
    assert jnp.allclose(out, ref, atol=1e-5, rtol=1e-5), "mismatch (aligned case)"

    # Case 2: odd spatial extent -> exercises the 128-lane padding path.
    x_odd = jax.random.normal(k1, (2, 3, 17, 9), dtype=jnp.float32)
    out_odd = jax.block_until_ready(corner_response(x_odd))
    assert out_odd.shape == (2, 1, 17, 9), out_odd.shape
    assert jnp.allclose(out_odd, corner_response_ref(x_odd), atol=1e-5, rtol=1e-5), \
        "mismatch (padded case)"

    # Case 3: force multiple spatial tiles with a ragged last block
    # (rows=36, tile_rows=8 -> 5 spatial steps, last one partial).
    x_big = jax.random.normal(k2, (1, 3, 72, 64), dtype=jnp.float32)
    out_big = jax.block_until_ready(corner_response(x_big, max_block_bytes=16 * 1024))
    assert jnp.allclose(out_big, corner_response_ref(x_big), atol=1e-5, rtol=1e-5), \
        "mismatch (ragged spatial tiles)"

    # Case 4: batch folding with a ragged last batch block (n=3 -> nb=2).
    x_b = jax.random.normal(k3, (3, 3, 16, 16), dtype=jnp.float32)
    out_b = jax.block_until_ready(corner_response(x_b))
    assert jnp.allclose(out_b, corner_response_ref(x_b), atol=1e-5, rtol=1e-5), \
        "mismatch (ragged batch fold)"

    print("KERNEL_OK")
</pallas_src>

<mosaic_0001>
module attributes {stable_mosaic.version = 11 : i64} {
  func.func @_corner_response_kernel(%arg0: i32, %arg1: i32, %arg2: memref<1x3x2x128xf32, #tpu.memory_space<vmem>>, %arg3: memref<1x1x2x128xf32, #tpu.memory_space<vmem>>) attributes {dimension_semantics = [#tpu.dimension_semantics<parallel>, #tpu.dimension_semantics<parallel>], iteration_bounds = array<i64: 2, 1>, scalar_prefetch = 0 : i64, scratch_operands = 0 : i64, tpu.core_type = #tpu.core_type<tc>, window_params = [{transform_indices = @transform_0, window_bounds = array<i64: 1, 3, 2, 128>}, {transform_indices = @transform_1, window_bounds = array<i64: 1, 1, 2, 128>}]} {
    %c0 = arith.constant 0 : index
    %c0_0 = arith.constant 0 : index
    %c0_1 = arith.constant 0 : index
    %c0_2 = arith.constant 0 : index
    %0 = vector.load %arg2[%c0, %c0_0, %c0_1, %c0_2] : memref<1x3x2x128xf32, #tpu.memory_space<vmem>>, vector<1x1x2x128xf32>
    %1 = vector.shape_cast %0 : vector<1x1x2x128xf32> to vector<1x2x128xf32>
    %c0_3 = arith.constant 0 : index
    %c1 = arith.constant 1 : index
    %c0_4 = arith.constant 0 : index
    %c0_5 = arith.constant 0 : index
    %2 = vector.load %arg2[%c0_3, %c1, %c0_4, %c0_5] : memref<1x3x2x128xf32, #tpu.memory_space<vmem>>, vector<1x1x2x128xf32>
    %3 = vector.shape_cast %2 : vector<1x1x2x128xf32> to vector<1x2x128xf32>
    %c0_6 = arith.constant 0 : index
    %c2 = arith.constant 2 : index
    %c0_7 = arith.constant 0 : index
    %c0_8 = arith.constant 0 : index
    %4 = vector.load %arg2[%c0_6, %c2, %c0_7, %c0_8] : memref<1x3x2x128xf32, #tpu.memory_space<vmem>>, vector<1x1x2x128xf32>
    %5 = vector.shape_cast %4 : vector<1x1x2x128xf32> to vector<1x2x128xf32>
    %6 = arith.mulf %1, %3 : vector<1x2x128xf32>
    %7 = arith.mulf %5, %5 : vector<1x2x128xf32>
    %8 = arith.subf %6, %7 : vector<1x2x128xf32>
    %9 = arith.addf %1, %3 : vector<1x2x128xf32>
    %10 = arith.mulf %9, %9 : vector<1x2x128xf32>
    %cst = arith.constant 5.000000e-02 : f32
    %11 = vector.broadcast %cst : f32 to vector<1x2x128xf32>
    %12 = arith.mulf %11, %10 : vector<1x2x128xf32>
    %13 = arith.subf %8, %12 : vector<1x2x128xf32>
    %c0_9 = arith.constant 0 : index
    %c0_10 = arith.constant 0 : index
    %c0_11 = arith.constant 0 : index
    %c0_12 = arith.constant 0 : index
    %14 = vector.load %arg3[%c0_9, %c0_10, %c0_11, %c0_12] : memref<1x1x2x128xf32, #tpu.memory_space<vmem>>, vector<1x1x2x128xf32>
    %15 = vector.shape_cast %14 : vector<1x1x2x128xf32> to vector<1x2x128xf32>
    %16 = vector.shape_cast %13 : vector<1x2x128xf32> to vector<1x1x2x128xf32>
    tpu.vector_store %arg3[%c0_9, %c0_10, %c0_11, %c0_12], %16 {strides = array<i32>} : memref<1x1x2x128xf32, #tpu.memory_space<vmem>>, vector<1x1x2x128xf32>,
    return
  }
  func.func @transform_0(%arg0: i32, %arg1: i32) -> (i32, i32, i32, i32) {
    %c0_i32 = arith.constant 0 : i32
    %c0_i32_0 = arith.constant 0 : i32
    %c0_i32_1 = arith.constant 0 : i32
    return %arg0, %c0_i32, %arg1, %c0_i32_0 : i32, i32, i32, i32
  }
  func.func @transform_1(%arg0: i32, %arg1: i32) -> (i32, i32, i32, i32) {
    %c0_i32 = arith.constant 0 : i32
    %c0_i32_0 = arith.constant 0 : i32
    %c0_i32_1 = arith.constant 0 : i32
    return %arg0, %c0_i32, %arg1, %c0_i32_0 : i32, i32, i32, i32
  }
}

</mosaic_0001>

<bundles_post_ra>
// kernel: tpu_custom_call.1
= control target key start
LH: loop header
LB: loop body
LE: loop exit
PB: predicated region body
PF: predicated region fallthrough
CT: control target
= control target key end

     0   :  { %6 = vsyncpa [#allocation3], 0  ;;  %s598_s0 = inlined_call_operand.hbm [shape: f32[2,3,2,128], index: 0, kind: input, shape index: {}]   ;;  %s599_s1 = inlined_call_operand.hbm [shape: f32[2,1,2,128], index: 1, kind: output, shape index: {}]  }
   0x1   :  { %8 = vsyncpa [#allocation3 + $0x1], 0 }
   0x2   :  { %9 = vsyncpa [#allocation4], 0 }
   0x3   :  { %11 = vsyncpa [#allocation4 + $0x1], 0  ;;  %s465_s6 = smov 0   ;;  %s467_s7 = smov 0  }
   0x4   :  { %s469_s8 = smov 0   ;;  %s471_s9 = smov 0  }
   0x5   :  { %s473_s10 = smov 0   ;;  %s475_s11 = smov 0  }
   0x6 LB: > { %s261_s12 = sadd.s32 4294967295, %s449_s11   ;;  %s262_s13 = sadd.s32 4294967294, %s449_s11   ;;  %s449_s11 = sphi %s475_s11, %s17_s11   ;;  %s445_s10 = sphi %s473_s10, %s610_s10   ;;  %s441_s9 = sphi %s471_s9, %s609_s9   ;;  %s437_s8 = sphi %s469_s8, %s608_s8   ;;  %s433_s7 = sphi %s467_s7, %s607_s7   ;;  %s429_s6 = sphi %s465_s6, %s606_s6  }
   0x7   : > { %s29_s14 = sadd.s32 1, %s445_s10  ;;  %s38_s15 = sadd.s32 1, %s437_s8 }
   0x8   : > { %p31_p0 = scmp.ge.s32.totalorder %s29_s14, 2  ;;  %p45_p1 = scmp.ne.s32.totalorder %s437_s8, %s433_s7 }
   0x9   : > { %p46_p2 = scmp.eq.s32.totalorder %s449_s11, 0  ;;  %p51_p3 = scmp.ne.s32.totalorder %s433_s7, %s429_s6 }
   0xa   : > { %s612_s14 = smov (%p31_p0, %s29_s14), 0  ;;  %p52_p5 = scmp.eq.s32.totalorder %s261_s12, 0 }
   0xb   : > { %p506_p4 = por %p46_p2, %p45_p1  ;;  %s33_s17 = ssub.s32 %s445_s10, %s612_s14 }
   0xc   : > { %p77_p6 = scmp.eq.s32.totalorder %s261_s12, 1  ;;  %p36_p7 = scmp.eq.s32.totalorder %s33_s17, 0 }
   0xd   : > { %p512_p8 = por %p52_p5, %p51_p3  ;;  %p83_p10 = scmp.eq.s32.totalorder %s262_s13, 1 }
   0xe   : > { %p516_p9 = por %p77_p6, %p45_p1  ;;  %p289_p13 = scmp.lt.s32.totalorder %s449_s11, 2 }
   0xf   : > { %s521_s20 = scalar_select %p36_p7, %s437_s8, %s38_s15  }
  0x10   : > { %p523_p11 = por %p83_p10, %p51_p3  ;;  %s103_s22 = sand.u32 1, %s437_s8  }
  0x11   : > { %s274_s23 = smul.u32 6, %s103_s22  ;;  %p533_p0 = pnand %p289_p13, %p506_p4 }
  0x12   : > { %s275_s24 = smul.u32 96, %s445_s10  ;;  %p266_p1 = scmp.ge.s32.totalorder %s449_s11, 1 }
  0x13   : > { %s107_s29 = scalar_lea.vmem [#allocation2], %s274_s23  ;;  %s104_s2 = scalar_lea.sflag [#allocation3], %s103_s22 }
  0x14   : > { %s114_s28 = scalar_lea.hbm %s598_s0, %s275_s24  ;;  %s115_s30 = sshll.u32 %s107_s29, 4  ;;  %s116_s30 = int_to_ptr.vmem [resolvable:$true] %s115_s30 }
  0x15   : > { %p343_p2 = pneg %p533_p0  ;;  %s354_s3 = scalar_lea.vmem %s116_s30, 96 }
  0x16   : > { %p355_p3 = scmp.ne.s32.totalorder %s116_s30, %s354_s3  ;;  %s451_s4 = smov [#allocation2]  }
  0x17   : > { %s359_s5 = sshll.u32 %s451_s4, 4  ;;  %s360_s5 = int_to_ptr.vmem [resolvable:$false] %s359_s5 }
  0x18   : > { %p357_p5 = pnand %p355_p3, %p343_p2  ;;  %s361_s12 = scalar_lea.vmem %s360_s5, 192 }
  0x19   : > { %p362_p4 = scmp.lt.s32.totalorder %s116_s30, %s360_s5  ;;  %p363_p7 = scmp.lt.s32.totalorder %s361_s12, %s354_s3 }
  0x1a   : > { %p358_p6 = pneg %p357_p5 }
  0x1b   : > { %p364_p10 = por %p363_p7, %p362_p4 }
  0x1d   : > { %p365_p13 = pnand %p364_p10, %p358_p6 }
  0x1f   : > { %368 = shalt.err (!%p365_p13)
}
  0x20   : > { %s452_s13 = smov 32   ;;  %s453_s15 = smov 2  }
  0x21   : > { %284 = dma.hbm_to_vmem [thread:$0]  (!%p533_p0), %s114_s28, 96, %s116_s30, %s104_s2, %s452_s13, %s452_s13, %s453_s15  }
  0x22   : > { %p123_p12 = scmp.lt.s32.totalorder %s449_s11, 3 }
  0x24   : > { %p124_p2 = pnand %p266_p1, %p123_p12 }
  0x25   : > { %s549_s16 = sand.u32 (!%p124_p2), 1, %s433_s7  }
  0x26   : > { %127 = sbr.rel (%p124_p2) target bundleno = 69 (0x45), region = 24  ;;  %s130_s22 = scalar_lea.sflag (!%p124_p2), [#allocation3], %s549_s16 }
  0x27   : > { %s276_s17 = smul.u32 (!%p124_p2), 6, %s549_s16 }
  0x29   : > { %s133_s23 = scalar_lea.vmem (!%p124_p2), [#allocation2], %s276_s17 }
  0x2b   : > { %420 = dma.done.wait (%p512_p8), %s130_s22, 96  }
  0x2c   : > { %422 = vsyncadd (%p512_p8), %s130_s22, 4294967200  ;;  %s267_s24 = sshll.u32 %s549_s16, 1  ;;  %v152_v0 = vld [vmem:[%s133_s23] sm:$0x3]  ;;  %v268_v1 = vld [vmem:[%s133_s23 + $0x2] sm:$0x3] }
  0x2d   : > { %v269_v2 = vld [vmem:[%s133_s23 + $0x4] sm:$0x3]  ;;  %v157_v3 = vmul.f32 %v268_v1, %v152_v0  ;;  %v160_v5 = vadd.f32 %v268_v1, %v152_v0  ;;  %s151_s25 = scalar_lea.vmem [#allocation5], %s267_s24  ;;  %s271_s27 = sshll.u32 %s441_s9, 5 }
  0x2e   : > { %v158_v4 = vmul.f32 %v269_v2, %v269_v2  ;;  %s180_s26 = sshll.u32 %s151_s25, 4  ;;  %s178_s29 = scalar_lea.hbm %s599_s1, %s271_s27  ;;  %s181_s26 = int_to_ptr.vmem [resolvable:$true] %s180_s26 }
  0x2f   : > { %v161_v7 = vmul.f32 %v160_v5, %v160_v5  ;;  %s166_s30 = scalar_lea.sflag [#allocation4], %s549_s16  ;;  %s369_s2 = scalar_lea.vmem %s181_s26, 32 }
  0x30   : > { %v159_v6 = vsub.f32 %v157_v3, %v158_v4  ;;  %p370_p8 = scmp.ne.s32.totalorder %s181_s26, %s369_s2  ;;  %s454_s3 = smov [#allocation5]  }
  0x31   : > { %v162_v8 = vmul.f32 0.05, %v161_v7  ;;  %s373_s4 = sshll.u32 %s454_s3, 4  ;;  %s374_s4 = int_to_ptr.vmem [resolvable:$false] %s373_s4 }
  0x32   : > { %p371_p12 = pnand %p370_p8, %p516_p9  ;;  %s375_s5 = scalar_lea.vmem %s374_s4, 64 }
  0x33   : > { %v163_v9 = vsub.f32 %v159_v6, %v162_v8  ;;  %p376_p1 = scmp.lt.s32.totalorder %s181_s26, %s374_s4  ;;  %p377_p3 = scmp.lt.s32.totalorder %s375_s5, %s369_s2 }
  0x34   : > { %p372_p0 = pneg %p371_p12 }
  0x35   : > { %164 = vst [vmem:[%s151_s25] sm:$0x3] %v163_v9  ;;  %p378_p5 = por %p377_p3, %p376_p1 }
  0x37   : > { %p379_p6 = pnand %p378_p5, %p372_p0 }
  0x39   : > { %382 = shalt.err (!%p379_p6)
}
  0x3a   : > { %s383_s9 = scalar_lea.hbm %s178_s29, 32  ;;  %s387_s15 = scalar_lea.hbm %s599_s1, 64 }
  0x3b   : > { %p384_p4 = scmp.ne.s32.totalorder %s178_s29, %s383_s9  ;;  %p388_p13 = scmp.lt.s32.totalorder %s178_s29, %s599_s1 }
  0x3c   : > { %p389_p2 = scmp.lt.s32.totalorder %s387_s15, %s383_s9 }
  0x3d   : > { %p385_p7 = pnand %p384_p4, %p516_p9 }
  0x3e   : > { %p390_p8 = por %p389_p2, %p388_p13 }
  0x3f   : > { %p386_p10 = pneg %p385_p7 }
  0x41   : > { %p391_p12 = pnand %p390_p8, %p386_p10 }
  0x43   : > { %394 = shalt.err (!%p391_p12)
}
  0x44   : > { %279 = dma.vmem_to_hbm [thread:$0]  (%p516_p9), %s181_s26, 32, %s178_s29, %s166_s30  }
  0x45 PF: > { %s192_s22 = sand.u32 1, %s429_s6   ;;  %p605_p0 = scmp.ge.s32.totalorder %s449_s11, 2 }
  0x46   : > { %s193_s23 = scalar_lea.sflag [#allocation4], %s192_s22 }
  0x47   : > { %p286_p1 = pnand %p605_p0, %p523_p11 }
  0x49   : > { %p287_p3 = pneg %p286_p1 }
  0x4b   : > { %424 = dma.done.wait (%p287_p3), %s193_s23, 32  }
  0x4c   : > { %426 = vsyncadd (%p287_p3), %s193_s23, 4294967264  ;;  %s17_s11 = sadd.s32 1, %s449_s11   ;;  %s606_s6 = smov %s433_s7 }
  0x4d   : > { %p14_p5 = scmp.ge.s32.totalorder %s17_s11, 4   ;;  %s607_s7 = smov %s437_s8 }
  0x4e   : > { %s608_s8 = smov %s521_s20  ;;  %s609_s9 = smov %s445_s10 }
  0x4f   : > { %s610_s10 = smov %s612_s14  ;;  %16 = sbr.rel (!%p14_p5) target bundleno = 6 (0x6), region = 71 }
  0x54   :  { %198 = vsyncpa [#allocation3], 1 }
  0x55   :  { %200 = vsyncpa [#allocation3 + $0x1], 1 }
  0x56   :  { %201 = vsyncpa [#allocation4], 1 }
  0x57   :  { %203 = vsyncpa [#allocation4 + $0x1], 1 }

</bundles_post_ra>
